<compile_context>
chip_gen: v6e
topology: v6e:2x2x1
jax: 0.10.0
libtpu: 0.0.40
codegen_flags: <defaults>
</compile_context>

<pallas_src>
import functools

import numpy as np

import jax
import jax.numpy as jnp
from jax.experimental import pallas as pl
from jax.experimental.pallas import tpu as pltpu


# ------------------------------- Pallas kernel ------------------------------

def _upsample_conv1x1_kernel(x_ref, ah_ref, wm_ref, b_ref, o_ref, z_ref):
    # x_ref : (1, H, W*Cin)       input image (W, Cin flattened onto lanes), bf16
    # ah_ref: (TOH, H)            rows of the H-interpolation matrix, bf16
    # wm_ref: (W*Cin, OWCP)       fused (W-interp (x) 1x1-conv) operator, bf16
    # b_ref : (1, OWCP)           bias tiled along OW (f32)
    # o_ref : (1, TOH, OWCP)      lane-dense output slab (f32)
    # z_ref : (H, OWCP) scratch   per-image cache of x @ wm (bf16)
    @pl.when(pl.program_id(1) == 0)
    def _():
        # Expensive term runs once per image, not once per row tile.
        z_ref[...] = jnp.dot(
            x_ref[0], wm_ref[...],
            preferred_element_type=jnp.float32).astype(z_ref.dtype)

    y = jnp.dot(ah_ref[...], z_ref[...],
                preferred_element_type=jnp.float32) + b_ref[...]
    o_ref[0] = y.astype(o_ref.dtype)


# ------------------------------ host-side helpers ---------------------------

def _round_up(a, b):
    return ((a + b - 1) // b) * b


def _interp_matrix(in_size, out_size):
    """(out_size, in_size) matrix for 1-D bilinear interpolation, matching
    torch F.interpolate(mode='bilinear', align_corners=True)."""
    a = np.zeros((out_size, in_size), np.float32)
    if out_size == 1 or in_size == 1:
        a[:, 0] = 1.0
        return a
    scale = (in_size - 1) / (out_size - 1)
    for o in range(out_size):
        src = o * scale
        lo = min(int(np.floor(src)), in_size - 1)
        hi = min(lo + 1, in_size - 1)
        frac = np.float32(src - lo)
        a[o, lo] += np.float32(1.0) - frac
        a[o, hi] += frac
    return a


def _bspec(shape, index_map, single_buffer=False):
    """BlockSpec; constant broadcast operands can request single buffering."""
    if single_buffer:
        return pl.BlockSpec(shape, index_map, pipeline_mode=pl.Buffered(1))
    return pl.BlockSpec(shape, index_map)


def _pick_row_tile(out_h, h, wcin, owcp, cdt_bytes, out_bytes, budget_bytes):
    """Largest multiple-of-16 output-row tile whose per-step footprint fits the
    VMEM budget (no artificial 'prefer many grid steps' heuristic: per-step
    overhead dominates at small sizes, so bigger tiles == fewer steps == faster)."""
    fixed = (2 * h * wcin * cdt_bytes          # x block (double-buffered)
             + 2 * wcin * owcp * cdt_bytes     # wm
             + 2 * owcp * 4                    # bias
             + h * owcp * cdt_bytes)           # z scratch
    per_row = 2 * h * cdt_bytes + 2 * owcp * out_bytes   # a_h row + out row (x2 bufs)
    avail = max(budget_bytes - fixed, 0)
    max_rows = max(avail // max(per_row, 1), 16)
    toh = min(_round_up(out_h, 16), 512, (max_rows // 16) * 16)
    return max(int(toh), 16)


def upsample_forward(x_nchw, w_conv, b_conv, *, size, compute_dtype=jnp.bfloat16):
    """UpSample forward. x_nchw: (N, Cin, H, W); w_conv: (Cin, Cout);
    b_conv: (Cout,); size = (out_h, out_w). Returns (N, Cout, out_h, out_w)."""
    out_h, out_w = size
    n, cin, h, w = x_nchw.shape
    cout = w_conv.shape[1]
    wcin = w * cin
    owc = out_w * cout
    owcp = _round_up(owc, 128)           # lane-dense output (unmasked vst)

    # Boundary transpose NCHW -> (N, H, W*Cin); lane dims are W*Cin / OW*Cout.
    x = jnp.transpose(x_nchw, (0, 2, 3, 1)).reshape(n, h, wcin).astype(compute_dtype)

    cdt_bytes = jnp.dtype(compute_dtype).itemsize
    out_bytes = jnp.dtype(x_nchw.dtype).itemsize

    toh = _pick_row_tile(out_h, h, wcin, owcp, cdt_bytes, out_bytes,
                         budget_bytes=32 << 20)
    ohp = _round_up(out_h, toh)

    # Static (trace-time) interpolation operators.
    a_h_np = np.zeros((ohp, h), np.float32)
    a_h_np[:out_h] = _interp_matrix(h, out_h)
    a_h = jnp.asarray(a_h_np).astype(compute_dtype)          # (OHP, H)
    a_w = jnp.asarray(_interp_matrix(w, out_w))               # (OW,  W), f32

    # Fused (W-interp (x) 1x1 conv) operator and OW-tiled bias (built once per jit).
    wm = jnp.einsum('ow,ic->wioc', a_w, w_conv).reshape(wcin, owc)
    b_row = jnp.tile(b_conv, out_w).reshape(1, owc).astype(jnp.float32)
    if owcp != owc:
        wm = jnp.pad(wm, ((0, 0), (0, owcp - owc)))
        b_row = jnp.pad(b_row, ((0, 0), (0, owcp - owc)))
    wm = wm.astype(compute_dtype)

    wm_bytes = wcin * owcp * cdt_bytes
    single_buf_wm = wm_bytes > (4 << 20)     # only bother when wm is actually big

    grid = (n, ohp // toh)

    vmem_need = (2 * h * wcin * cdt_bytes
                 + 2 * toh * h * cdt_bytes
                 + (1 if single_buf_wm else 2) * wm_bytes
                 + 2 * owcp * 4
                 + 2 * toh * owcp * out_bytes
                 + h * owcp * cdt_bytes)
    vmem_limit = int(min(max(2 * vmem_need, 32 << 20), 64 << 20))  # v7x-safe clamp

    y = pl.pallas_call(
        _upsample_conv1x1_kernel,
        out_shape=jax.ShapeDtypeStruct((n, ohp, owcp), x_nchw.dtype),
        grid_spec=pltpu.PrefetchScalarGridSpec(
            num_scalar_prefetch=0,
            grid=grid,
            in_specs=[
                _bspec((1, h, wcin), lambda i, t: (i, 0, 0)),
                _bspec((toh, h), lambda i, t: (t, 0)),
                _bspec((wcin, owcp), lambda i, t: (0, 0),
                       single_buffer=single_buf_wm),
                _bspec((1, owcp), lambda i, t: (0, 0)),
            ],
            out_specs=pl.BlockSpec((1, toh, owcp), lambda i, t: (i, t, 0)),
            scratch_shapes=[pltpu.VMEM((h, owcp), compute_dtype)],
        ),
        compiler_params=pltpu.CompilerParams(
            dimension_semantics=("parallel", "arbitrary"),
            vmem_limit_bytes=vmem_limit),
    )(x, a_h, wm, b_row)

    y = y[:, :out_h, :owc].reshape(n, out_h, out_w, cout)
    return jnp.transpose(y, (0, 3, 1, 2))                     # back to NCHW


# ------------------------- plain-JAX reference (check) ----------------------

def _reference_upsample(x_nchw, w_conv, b_conv, size):
    out_h, out_w = size
    _, _, h, w = x_nchw.shape
    x = jnp.transpose(x_nchw, (0, 2, 3, 1))                   # NHWC

    def coords(inp, out):
        if out == 1 or inp == 1:
            return jnp.zeros((out,), jnp.float32)
        return jnp.arange(out, dtype=jnp.float32) * ((inp - 1) / (out - 1))

    ys, xs = coords(h, out_h), coords(w, out_w)
    y0 = jnp.clip(jnp.floor(ys).astype(jnp.int32), 0, h - 1)
    x0 = jnp.clip(jnp.floor(xs).astype(jnp.int32), 0, w - 1)
    y1 = jnp.minimum(y0 + 1, h - 1)
    x1 = jnp.minimum(x0 + 1, w - 1)
    wy = (ys - y0.astype(jnp.float32))[None, :, None, None]
    wx = (xs - x0.astype(jnp.float32))[None, None, :, None]
    top, bot = x[:, y0], x[:, y1]
    tl, tr = top[:, :, x0], top[:, :, x1]
    bl, br = bot[:, :, x0], bot[:, :, x1]
    r = (tl * (1 - wy) * (1 - wx) + tr * (1 - wy) * wx
         + bl * wy * (1 - wx) + br * wy * wx)
    y = jnp.einsum('nhwc,cd->nhwd', r, w_conv) + b_conv
    return jnp.transpose(y, (0, 3, 1, 2))


# ----------------------------------- main ------------------------------------

if __name__ == "__main__":
    B, CIN, COUT, H, W = 2, 4, 8, 16, 16
    OUT_H, OUT_W = 32, 32                                     # forward(x, size=(32, 32))

    key = jax.random.PRNGKey(0)
    kx, kw, kb = jax.random.split(key, 3)
    x = jax.random.normal(kx, (B, CIN, H, W), jnp.float32)
    w_conv = 0.1 * jax.random.normal(kw, (CIN, COUT), jnp.float32)
    b_conv = 0.1 * jax.random.normal(kb, (COUT,), jnp.float32)

    fwd = jax.jit(functools.partial(upsample_forward, size=(OUT_H, OUT_W)))
    out = fwd(x, w_conv, b_conv)
    jax.block_until_ready(out)
    assert out.shape == (B, COUT, OUT_H, OUT_W)

    ref = _reference_upsample(x, w_conv, b_conv, (OUT_H, OUT_W))
    max_err = float(jnp.max(jnp.abs(out - ref)))
    # Tolerance loosened vs. the f32 version because the matmul operands are bf16
    # (MXU accumulation stays f32, bias add / output are f32).
    assert max_err < 5e-2, f"max abs error vs reference: {max_err}"
    print("KERNEL_OK")
</pallas_src>

<mosaic_0001>
module attributes {stable_mosaic.version = 11 : i64} {
  func.func @_upsample_conv1x1_kernel(%arg0: i32, %arg1: i32, %arg2: memref<1x16x64xbf16, #tpu.memory_space<vmem>>, %arg3: memref<32x16xbf16, #tpu.memory_space<vmem>>, %arg4: memref<64x256xbf16, #tpu.memory_space<vmem>>, %arg5: memref<1x256xf32, #tpu.memory_space<vmem>>, %arg6: memref<1x32x256xf32, #tpu.memory_space<vmem>>, %arg7: memref<16x256xbf16, #tpu.memory_space<vmem>>) attributes {dimension_semantics = [#tpu.dimension_semantics<parallel>, #tpu.dimension_semantics<arbitrary>], iteration_bounds = array<i64: 2, 1>, scalar_prefetch = 0 : i64, scratch_operands = 1 : i64, tpu.core_type = #tpu.core_type<tc>, window_params = [{transform_indices = @transform_0, window_bounds = array<i64: 1, 16, 64>}, {transform_indices = @transform_1, window_bounds = array<i64: 32, 16>}, {pipeline_mode = #tpu.pipeline_mode<synchronous>, transform_indices = @transform_2, window_bounds = array<i64: 64, 256>}, {pipeline_mode = #tpu.pipeline_mode<synchronous>, transform_indices = @transform_3, window_bounds = array<i64: 1, 256>}, {transform_indices = @transform_4, window_bounds = array<i64: 1, 32, 256>}]} {
    %c0_i32 = arith.constant 0 : i32
    %0 = arith.cmpi eq, %arg1, %c0_i32 : i32
    %1 = arith.extui %0 : i1 to i32
    %c0_i32_0 = arith.constant 0 : i32
    %2 = arith.cmpi ne, %1, %c0_i32_0 : i32
    scf.if %2 {
      %c0_9 = arith.constant 0 : index
      %c0_10 = arith.constant 0 : index
      %c0_11 = arith.constant 0 : index
      %12 = vector.load %arg2[%c0_9, %c0_10, %c0_11] : memref<1x16x64xbf16, #tpu.memory_space<vmem>>, vector<1x16x64xbf16>
      %13 = vector.shape_cast %12 : vector<1x16x64xbf16> to vector<16x64xbf16>
      %c0_12 = arith.constant 0 : index
      %c0_13 = arith.constant 0 : index
      %14 = vector.load %arg4[%c0_12, %c0_13] : memref<64x256xbf16, #tpu.memory_space<vmem>>, vector<64x256xbf16>
      %cst_14 = arith.constant dense<0.000000e+00> : vector<16x256xf32>
      %15 = tpu.matmul %13, %14, %cst_14 {dimension_numbers = #tpu.dot_dimension_numbers<[1], [0], [0], [1], [0, 0, 1, 1], [], []>} : vector<16x64xbf16>, vector<64x256xbf16>, vector<16x256xf32> -> vector<16x256xf32>
      %16 = arith.truncf %15 : vector<16x256xf32> to vector<16x256xbf16>
      %c0_15 = arith.constant 0 : index
      %c0_16 = arith.constant 0 : index
      %17 = vector.load %arg7[%c0_15, %c0_16] : memref<16x256xbf16, #tpu.memory_space<vmem>>, vector<16x256xbf16>
      tpu.vector_store %arg7[%c0_15, %c0_16], %16 {strides = array<i32>} : memref<16x256xbf16, #tpu.memory_space<vmem>>, vector<16x256xbf16>,
    } else {
    }
    %c0 = arith.constant 0 : index
    %c0_1 = arith.constant 0 : index
    %3 = vector.load %arg3[%c0, %c0_1] : memref<32x16xbf16, #tpu.memory_space<vmem>>, vector<32x16xbf16>
    %c0_2 = arith.constant 0 : index
    %c0_3 = arith.constant 0 : index
    %4 = vector.load %arg7[%c0_2, %c0_3] : memref<16x256xbf16, #tpu.memory_space<vmem>>, vector<16x256xbf16>
    %cst = arith.constant dense<0.000000e+00> : vector<32x256xf32>
    %5 = tpu.matmul %3, %4, %cst {dimension_numbers = #tpu.dot_dimension_numbers<[1], [0], [0], [1], [0, 0, 1, 1], [], []>} : vector<32x16xbf16>, vector<16x256xbf16>, vector<32x256xf32> -> vector<32x256xf32>
    %c0_4 = arith.constant 0 : index
    %c0_5 = arith.constant 0 : index
    %6 = vector.load %arg5[%c0_4, %c0_5] : memref<1x256xf32, #tpu.memory_space<vmem>>, vector<1x256xf32>
    %7 = vector.broadcast %6 : vector<1x256xf32> to vector<32x256xf32>
    %8 = arith.addf %5, %7 : vector<32x256xf32>
    %c0_6 = arith.constant 0 : index
    %c0_7 = arith.constant 0 : index
    %c0_8 = arith.constant 0 : index
    %9 = vector.load %arg6[%c0_6, %c0_7, %c0_8] : memref<1x32x256xf32, #tpu.memory_space<vmem>>, vector<1x32x256xf32>
    %10 = vector.shape_cast %9 : vector<1x32x256xf32> to vector<32x256xf32>
    %11 = vector.shape_cast %8 : vector<32x256xf32> to vector<1x32x256xf32>
    tpu.vector_store %arg6[%c0_6, %c0_7, %c0_8], %11 {strides = array<i32>} : memref<1x32x256xf32, #tpu.memory_space<vmem>>, vector<1x32x256xf32>,
    return
  }
  func.func @transform_0(%arg0: i32, %arg1: i32) -> (i32, i32, i32) {
    %c0_i32 = arith.constant 0 : i32
    %c0_i32_0 = arith.constant 0 : i32
    %c0_i32_1 = arith.constant 0 : i32
    return %arg0, %c0_i32, %c0_i32_0 : i32, i32, i32
  }
  func.func @transform_1(%arg0: i32, %arg1: i32) -> (i32, i32) {
    %c0_i32 = arith.constant 0 : i32
    %c0_i32_0 = arith.constant 0 : i32
    return %arg1, %c0_i32 : i32, i32
  }
  func.func @transform_2(%arg0: i32, %arg1: i32) -> (i32, i32) {
    %c0_i32 = arith.constant 0 : i32
    %c0_i32_0 = arith.constant 0 : i32
    %c0_i32_1 = arith.constant 0 : i32
    return %c0_i32, %c0_i32_0 : i32, i32
  }
  func.func @transform_3(%arg0: i32, %arg1: i32) -> (i32, i32) {
    %c0_i32 = arith.constant 0 : i32
    %c0_i32_0 = arith.constant 0 : i32
    %c0_i32_1 = arith.constant 0 : i32
    return %c0_i32, %c0_i32_0 : i32, i32
  }
  func.func @transform_4(%arg0: i32, %arg1: i32) -> (i32, i32, i32) {
    %c0_i32 = arith.constant 0 : i32
    %c0_i32_0 = arith.constant 0 : i32
    return %arg0, %arg1, %c0_i32 : i32, i32, i32
  }
}

</mosaic_0001>

<bundles_post_ra>
// kernel: tile.8
= control target key start
LH: loop header
LB: loop body
LE: loop exit
PB: predicated region body
PF: predicated region fallthrough
CT: control target
= control target key end

     0   :  { %s40_s0 = inlined_call_operand.vmem [shape: f32[8], index: 0, kind: input, shape index: {}]   ;;  %s41_s1 = inlined_call_operand.vmem [shape: f32[32,8], index: 1, kind: output, shape index: {}]  }
   0x1   :  { %v4_v0 = vld [vmem:[%s40_s0] ss:$0 sm:$0xff] }
   0x2   :  { %5 = vst [vmem:[%s41_s1] sm:$0xff] %v4_v0  ;;  %12 = vst [vmem:[%s41_s1 + $0x8] sm:$0xff] %v4_v0 }
   0x3   :  { %13 = vst [vmem:[%s41_s1 + $0x10] sm:$0xff] %v4_v0  ;;  %14 = vst [vmem:[%s41_s1 + $0x18] sm:$0xff] %v4_v0 }

// kernel: tile.9
= control target key start
LH: loop header
LB: loop body
LE: loop exit
PB: predicated region body
PF: predicated region fallthrough
CT: control target
= control target key end

     0   :  { %s7_s6 = smov 3  ;;  %s21_s9 = smov 3  ;;  %vm4_vm0 = vcmask 64512   ;;  %vm11_vm1 = vcmask 1048512   ;;  %vm18_vm2 = vcmask 982912   ;;  %vm25_vm3 = vcmask 917312   ;;  %s235_s0 = inlined_call_operand.vmem [shape: f32[32,8], index: 0, kind: input, shape index: {}]   ;;  %s236_s1 = inlined_call_operand.vmem [shape: f32[1,256], index: 1, kind: output, shape index: {}]  }
   0x1   :  { %v125_v0 = vld [vmem:[%s235_s0 + $0xf] ss:$16 sm:%s7_s6]   ;;  %s156_s10 = smov 120   ;;  %v127_v1 = vld [vmem:[%s235_s0 + $0xd] ss:$16 sm:%s21_s9]   ;;  %s14_s13 = smov 3 }
   0x2   :  { %9 = vrot.lane.b32.xlu0 %v125_v0, %s156_s10  ;;  %s157_s14 = smov 104   ;;  %v126_v2 = vld [vmem:[%s235_s0 + $0xe] ss:$16 sm:%s14_s13]   ;;  %s28_s17 = smov 3  ;;  %vm32_vm4 = vcmask 851712   ;;  %vm39_vm5 = vcmask 786112  }
   0x3   :  { %23 = vrot.lane.b32.xlu1 %v127_v1, %s157_s14  ;;  %v128_v3 = vld [vmem:[%s235_s0 + $0xc] ss:$16 sm:%s28_s17]   ;;  %s35_s20 = smov 3  ;;  %s42_s21 = smov 3  ;;  %vm46_vm6 = vcmask 720512   ;;  %vm53_vm7 = vcmask 654912  }
   0x4   :  { %s158_s22 = smov 112   ;;  %s159_s23 = smov 96   ;;  %v129_v4 = vld [vmem:[%s235_s0 + $0xb] ss:$16 sm:%s35_s20]   ;;  %v130_v5 = vld [vmem:[%s235_s0 + $0xa] ss:$16 sm:%s42_s21]  }
   0x5   :  { %s49_s28 = smov 3  ;;  %s56_s29 = smov 3  ;;  %vm60_vm8 = vcmask 589312   ;;  %vm67_vm9 = vcmask 523712   ;;  %vm74_vm10 = vcmask 458112   ;;  %vm81_vm11 = vcmask 392512  }
   0x6   :  { %16 = vrot.lane.b32.xlu0 %v126_v2, %s158_s22  ;;  %s160_s30 = smov 88   ;;  %s161_s2 = smov 80   ;;  %v131_v6 = vld [vmem:[%s235_s0 + $0x9] ss:$16 sm:%s49_s28]   ;;  %vm88_vm12 = vcmask 326912   ;;  %vm95_vm13 = vcmask 261312  }
   0x7   :  { %30 = vrot.lane.b32.xlu1 %v128_v3, %s159_s23  ;;  %v132_v7 = vld [vmem:[%s235_s0 + $0x8] ss:$16 sm:%s56_s29]   ;;  %s63_s7 = smov 3  ;;  %s70_s8 = smov 3  ;;  %vm102_vm14 = vcmask 195712   ;;  %vm109_vm15 = vcmask 130112  }
   0x8   :  { %s162_s9 = smov 72   ;;  %s163_s10 = smov 64   ;;  %v133_v8 = vld [vmem:[%s235_s0 + $0x7] ss:$16 sm:%s63_s7]   ;;  %v134_v9 = vld [vmem:[%s235_s0 + $0x6] ss:$16 sm:%s70_s8]  }
   0x9   :  { %s2_s13 = smov 3  ;;  %s77_s16 = smov 3 }
   0xa   :  { %37 = vrot.lane.b32.xlu0 %v129_v4, %s160_s30  ;;  %v3_v10 = vld [vmem:[%s235_s0] ss:$16 sm:%s2_s13]   ;;  %s84_s19 = smov 3  ;;  %s164_s20 = smov 56  }
   0xb   :  { %44 = vrot.lane.b32.xlu1 %v130_v5, %s161_s2  ;;  %5 = vst.msk [vmem:[#allocation0] ss:$8 sm:$0x3] %vm4_vm0, %v3_v10   ;;  %s165_s21 = smov 48   ;;  %v135_v11 = vld [vmem:[%s235_s0 + $0x5] ss:$16 sm:%s77_s16]  }
   0xc   :  { %v136_v12 = vld [vmem:[%s235_s0 + $0x4] ss:$16 sm:%s84_s19]   ;;  %s91_s26 = smov 3  ;;  %s98_s27 = smov 3 }
   0xd   :  { %s166_s28 = smov 40   ;;  %s167_s29 = smov 32   ;;  %v137_v13 = vld [vmem:[%s235_s0 + $0x3] ss:$16 sm:%s91_s26]   ;;  %v138_v14 = vld [vmem:[%s235_s0 + $0x2] ss:$16 sm:%s98_s27]  }
   0xe   :  { %51 = vrot.lane.b32.xlu0 %v131_v6, %s162_s9  ;;  %s105_s5 = smov 3  ;;  %s168_s6 = smov 24  }
   0xf   :  { %58 = vrot.lane.b32.xlu1 %v132_v7, %s163_s10  ;;  %s169_s7 = smov 16   ;;  %v139_v15 = vld [vmem:[%s235_s0 + $0x1] ss:$16 sm:%s105_s5]   ;;  %s170_s0 = smov 8  }
  0x12   :  { %65 = vrot.lane.b32.xlu0 %v133_v8, %s164_s20 }
  0x13   :  { %72 = vrot.lane.b32.xlu1 %v134_v9, %s165_s21 }
  0x16   :  { %79 = vrot.lane.b32.xlu0 %v135_v11, %s166_s28 }
  0x17   :  { %86 = vrot.lane.b32.xlu1 %v136_v12, %s167_s29 }
  0x1a   :  { %93 = vrot.lane.b32.xlu0 %v137_v13, %s168_s6 }
  0x1b   :  { %100 = vrot.lane.b32.xlu1 %v138_v14, %s169_s7 }
  0x1e   :  { %107 = vrot.lane.b32.xlu0 %v139_v15, %s170_s0 }
  0x74   :  { %v10_v16 = vpop.permute.xlu0 %9  }
  0x75   :  { %12 = vst.msk [vmem:[#allocation0] ss:$8 sm:$0x3] %vm11_vm1, %v10_v16   ;;  %v24_v17 = vpop.permute.xlu1 %23  }
  0x78   :  { %v17_v18 = vpop.permute.xlu0 %16  }
  0x79   :  { %19 = vst.msk [vmem:[#allocation0] ss:$8 sm:$0x3] %vm18_vm2, %v17_v18   ;;  %v31_v19 = vpop.permute.xlu1 %30  }
  0x7a   :  { %26 = vst.msk [vmem:[#allocation0] ss:$8 sm:$0x3] %vm25_vm3, %v24_v17  }
  0x7b   :  { %33 = vst.msk [vmem:[#allocation0] ss:$8 sm:$0x3] %vm32_vm4, %v31_v19  }
  0x7c   :  { %v38_v20 = vpop.permute.xlu0 %37  }
  0x7d   :  { %40 = vst.msk [vmem:[#allocation0] ss:$8 sm:$0x3] %vm39_vm5, %v38_v20   ;;  %v45_v21 = vpop.permute.xlu1 %44  }
  0x7e   :  { %47 = vst.msk [vmem:[#allocation0] ss:$8 sm:$0x3] %vm46_vm6, %v45_v21  }
  0x80   :  { %v52_v22 = vpop.permute.xlu0 %51  }
  0x81   :  { %54 = vst.msk [vmem:[#allocation0] ss:$8 sm:$0x3] %vm53_vm7, %v52_v22   ;;  %v59_v23 = vpop.permute.xlu1 %58  }
  0x82   :  { %61 = vst.msk [vmem:[#allocation0] ss:$8 sm:$0x3] %vm60_vm8, %v59_v23  }
  0x84   :  { %v66_v24 = vpop.permute.xlu0 %65  }
  0x85   :  { %68 = vst.msk [vmem:[#allocation0] ss:$8 sm:$0x3] %vm67_vm9, %v66_v24   ;;  %v73_v25 = vpop.permute.xlu1 %72  }
  0x86   :  { %75 = vst.msk [vmem:[#allocation0] ss:$8 sm:$0x3] %vm74_vm10, %v73_v25  }
  0x88   :  { %v80_v26 = vpop.permute.xlu0 %79  }
  0x89   :  { %82 = vst.msk [vmem:[#allocation0] ss:$8 sm:$0x3] %vm81_vm11, %v80_v26   ;;  %v87_v27 = vpop.permute.xlu1 %86  }
  0x8a   :  { %89 = vst.msk [vmem:[#allocation0] ss:$8 sm:$0x3] %vm88_vm12, %v87_v27  }
  0x8c   :  { %v94_v28 = vpop.permute.xlu0 %93  }
  0x8d   :  { %96 = vst.msk [vmem:[#allocation0] ss:$8 sm:$0x3] %vm95_vm13, %v94_v28   ;;  %v101_v29 = vpop.permute.xlu1 %100  }
  0x8e   :  { %103 = vst.msk [vmem:[#allocation0] ss:$8 sm:$0x3] %vm102_vm14, %v101_v29  }
  0x90   :  { %v108_v30 = vpop.permute.xlu0 %107  }
  0x91   :  { %110 = vst.msk [vmem:[#allocation0] ss:$8 sm:$0x3] %vm109_vm15, %v108_v30  }
  0x98   :  { %v115_v31 = vld [vmem:[#allocation0] sm:$0x1]  ;;  %v120_v32 = vld [vmem:[#allocation0 + $0x8] sm:$0x1] }
  0x99   :  { %118 = vst [vmem:[%s236_s1] sm:$0x1] %v115_v31  ;;  %140 = vst [vmem:[%s236_s1 + $0x1] sm:$0x1] %v120_v32 }

// kernel: upsample_forward.1
= control target key start
LH: loop header
LB: loop body
LE: loop exit
PB: predicated region body
PF: predicated region fallthrough
CT: control target
= control target key end

     0   :  { %s700_s15 = smov 0   ;;  %s702_s16 = smov 0   ;;  %s770_s0 = inlined_call_operand.vmem [shape: bf16[2,16,64], index: 0, kind: input, shape index: {}]   ;;  %s771_s1 = inlined_call_operand.vmem [shape: bf16[32,16], index: 1, kind: input, shape index: {}]   ;;  %s772_s2 = inlined_call_operand.vmem [shape: bf16[64,256], index: 2, kind: input, shape index: {}]   ;;  %s773_s3 = inlined_call_operand.vmem [shape: f32[1,256], index: 3, kind: input, shape index: {}]   ;;  %s774_s4 = inlined_call_operand.vmem [shape: f32[2,32,256], index: 4, kind: output, shape index: {}]  }
   0x1   :  { %s704_s17 = smov 0  }
   0x2 LB: > { %s26_s18 = sadd.s32 1, %s668_s16  ;;  %p579_p0 = scmp.ge.s32.totalorder %s672_s17, 1  ;;  %s672_s17 = sphi %s704_s17, %s14_s17   ;;  %s668_s16 = sphi %s702_s16, %s776_s16   ;;  %s664_s15 = sphi %s700_s15, %s775_s15  }
   0x3   : > { %p28_p1 = scmp.ge.s32.totalorder %s26_s18, 2  ;;  %p187_p2 = scmp.lt.s32.totalorder %s672_s17, 3 }
   0x5   : > { %s778_s18 = smov (%p28_p1, %s26_s18), 0  ;;  %p188_p3 = pnand %p579_p0, %p187_p2 }
   0x6   : > { %p223_p4 = scmp.lt.s32.totalorder (!%p188_p3), %s664_s15, 1 }
   0x7   : > { %191 = sbr.rel (%p188_p3) target bundleno = 445 (0x1bd), region = 36 }
   0xc   : > { %v635_v0 = vld [vmem:[%s772_s2 + $0x34] ss:$8 sps:$4 sm:$0xff]   ;;  %v637_v1 = vld [vmem:[%s772_s2 + $0x30] ss:$8 sps:$4 sm:$0xff]   ;;  %v674_v2 = vmov 0   ;;  %s780_s15 = smov (!%p223_p4, %s664_s15), 1  ;;  %v374_v18 = vlaneseq }
   0xd   : > { %341 = vmatprep.mubr.bf16.mxu0 %v674_v2  ;;  %443 = vmatprep.mubr.bf16.mxu1 %v674_v2  ;;  %v638_v3 = vld [vmem:[%s772_s2 + $0x24] ss:$8 sps:$4 sm:$0xff]   ;;  %v640_v4 = vld [vmem:[%s772_s2 + $0x20] ss:$8 sps:$4 sm:$0xff]   ;;  %v641_v5 = vld [vmem:[%s772_s2 + $0x14] ss:$8 sps:$4 sm:$0xff]  }
   0xe   : > { %317 = vmatprep.subr.bf16.mxu0 %v635_v0  ;;  %s604_s29 = sshll.u32 %s780_s15, 3  ;;  %v643_v6 = vld [vmem:[%s772_s2 + $0x10] ss:$8 sps:$4 sm:$0xff]   ;;  %v644_v7 = vld [vmem:[%s772_s2 + $0x4] ss:$8 sps:$4 sm:$0xff]   ;;  %vm305_vm0 = vcmask 523264  }
   0xf   : > { %318 = vmatpush1.bf16.msra.mxu0 %v637_v1  ;;  %s227_s6 = scalar_lea.vmem %s770_s0, %s604_s29  ;;  %v646_v8 = vld [vmem:[%s772_s2] ss:$8 sps:$4 sm:$0xff]   ;;  %vm404_vm1 = vcmask 130048   ;;  %v375_v19 = vshrl.u32 %v374_v18, 7  ;;  %s605_s23 = sshll.u32 %s780_s15, 6 }
  0x10   : > { %319 = vmatprep.subr.bf16.mxu0 %v638_v3  ;;  %v647_v9 = vld [vmem:[%s227_s6] sm:$0xff]   ;;  %v649_v17 = vld [vmem:[%s771_s1 + $0x8] sm:$0xff]   ;;  %s243_s26 = scalar_lea.vmem %s774_s4, %s605_s23 }
  0x11   : > { %v648_v16 = vld [vmem:[%s771_s1] sm:$0xff]   ;;  %v376_v20 = vsub.s32 0, %v375_v19  ;;  %v380_v22 = vsub.s32 1, %v375_v19 }
  0x12   : > { %v372_v21 = vld [vmem:[%s773_s3] sm:$0x3] }
  0x13   : > { %320 = vmatpush1.bf16.msra.mxu0 %v640_v4  ;;  %v377_v23 = vrot.slane %v372_v21, %v376_v20  ;;  %v381_v24 = vrot.slane %v372_v21, %v380_v22 }
  0x14   : > { %321 = vmatprep.subr.bf16.mxu0 %v641_v5 }
  0x17   : > { %322 = vmatpush1.bf16.msra.mxu0 %v643_v6 }
  0x18   : > { %323 = vmatprep.subr.bf16.mxu0 %v644_v7 }
  0x1b   : > { %324 = vmatpush1.bf16.msra.mxu0 %v646_v8 }
  0x1e   : > { %593 = vmatmul.mubr.msk.bf16.vlgmr.msra.gmra.mxu0 %vm305_vm0, %v647_v9 }
  0xde   : > { %v343_v10 = vpop.f32.mrf.mxu0 }
  0xe0   : > { %v345_v11 = vpop.f32.mrf.mxu0 }
  0xe2   : > { %v347_v12 = vpop.f32.mrf.mxu0 }
  0xe3   : > { %v608_v15 = vpack.c.bf16 %v347_v12, %v343_v10 }
  0xe4   : > { %v349_v13 = vpop.f32.mrf.mxu0 }
  0xe5   : > { %v609_v14 = vpack.c.bf16 %v349_v13, %v345_v11 }
  0xe7   : > { %425 = vmatprep.subr.bf16.mxu1 %v609_v14 }
  0xe8   : > { %426 = vmatpush1.bf16.msra.mxu1 %v608_v15 }
  0xeb   : > { %600 = vmatmul.mubr.msk.bf16.vlgmr.msra.gmra.mxu1 %vm404_vm1, %v648_v16 }
  0xec   : > { %453 = vmatprep.mubr.bf16.mxu1 %v674_v2 }
  0xf3   : > { %601 = vmatmul.mubr.msk.bf16.gmra.mxu1 %vm404_vm1, %v649_v17 }
 0x1ab   : > { %v445_v25 = vpop.f32.mrf.mxu1 }
 0x1ac   : > { %v446_v26 = vadd.f32 %v445_v25, %v377_v23 }
 0x1ad   : > { %v447_v27 = vpop.f32.mrf.mxu1 }
 0x1ae   : > { %464 = vst [vmem:[%s243_s26] sm:$0xff] %v446_v26  ;;  %v448_v28 = vadd.f32 %v447_v27, %v381_v24 }
 0x1af   : > { %v449_v29 = vpop.f32.mrf.mxu1 }
 0x1b0   : > { %465 = vst [vmem:[%s243_s26 + $0x8] sm:$0xff] %v448_v28  ;;  %v450_v30 = vadd.f32 %v449_v29, %v377_v23 }
 0x1b1   : > { %v451_v31 = vpop.f32.mrf.mxu1 }
 0x1b2   : > { %466 = vst [vmem:[%s243_s26 + $0x10] sm:$0xff] %v450_v30  ;;  %v452_v32 = vadd.f32 %v451_v31, %v381_v24 }
 0x1b3   : > { %v455_v33 = vpop.f32.mrf.mxu1 }
 0x1b4   : > { %467 = vst [vmem:[%s243_s26 + $0x18] sm:$0xff] %v452_v32  ;;  %v456_v34 = vadd.f32 %v455_v33, %v377_v23 }
 0x1b5   : > { %v457_v35 = vpop.f32.mrf.mxu1 }
 0x1b6   : > { %468 = vst [vmem:[%s243_s26 + $0x20] sm:$0xff] %v456_v34  ;;  %v458_v36 = vadd.f32 %v457_v35, %v381_v24 }
 0x1b7   : > { %v459_v37 = vpop.f32.mrf.mxu1 }
 0x1b8   : > { %469 = vst [vmem:[%s243_s26 + $0x28] sm:$0xff] %v458_v36  ;;  %v460_v38 = vadd.f32 %v459_v37, %v377_v23 }
 0x1b9   : > { %v461_v39 = vpop.f32.mrf.mxu1 }
 0x1ba   : > { %470 = vst [vmem:[%s243_s26 + $0x30] sm:$0xff] %v460_v38  ;;  %v462_v40 = vadd.f32 %v461_v39, %v381_v24 }
 0x1bc   : > { %471 = vst [vmem:[%s243_s26 + $0x38] sm:$0xff] %v462_v40 }
 0x1bd PF: > { %s14_s17 = sadd.s32 1, %s672_s17   ;;  %s775_s15 = smov %s668_s16 }
 0x1be   : > { %p11_p5 = scmp.ge.s32.totalorder %s14_s17, 4   ;;  %s776_s16 = smov %s778_s18 }
 0x1c0   :  { %13 = sbr.rel (!%p11_p5) target bundleno = 2 (0x2), region = 73 }

</bundles_post_ra>
